<compile_context>
chip_gen: v7x
topology: tpu7x:2x2x1
jax: 0.10.0
libtpu: 0.0.40
codegen_flags: <defaults>
</compile_context>

<pallas_src>
import functools
import math

import jax
import jax.numpy as jnp
from jax.experimental import pallas as pl
from jax.experimental.pallas import tpu as pltpu


# ---------------------------------------------------------------------------
# Kernel (one grid step = one independent (B, D) attention problem)
# ---------------------------------------------------------------------------
def _self_attention_kernel(x_ref, w_ref, b_ref, o_ref, *, d, d_pad):
    x = x_ref[...]                                               # (B, D) f32

    # Fused [K|Q|V] projection: one bf16 MXU pass, f32 accumulation.
    kqv = jnp.dot(x.astype(jnp.bfloat16), w_ref[...],
                  preferred_element_type=jnp.float32) + b_ref[...]   # (B, 3*Dp) f32

    # 128-aligned lane slices (pack_params pads each block to d_pad lanes).
    k = kqv[:, 0 * d_pad: 0 * d_pad + d]
    q = kqv[:, 1 * d_pad: 1 * d_pad + d]
    v = kqv[:, 2 * d_pad: 2 * d_pad + d]

    # scores = Q @ K^T / sqrt(D): bf16 operands, f32 accumulation, contract
    # the last dims directly (no explicit transpose).
    scores = jax.lax.dot_general(
        q.astype(jnp.bfloat16), k.astype(jnp.bfloat16),
        (((1,), (1,)), ((), ())),
        preferred_element_type=jnp.float32) * (1.0 / math.sqrt(d))   # (B, B)

    # Numerically-stable softmax; normalize AFTER the PV matmul so the exact
    # reciprocal of the tiny (B,1) denominator scales a lane-dense (B, D) slab.
    m = jnp.max(scores, axis=-1, keepdims=True)
    p = jnp.exp(scores - m)
    denom = jnp.sum(p, axis=-1, keepdims=True)
    pv = jnp.dot(p.astype(jnp.bfloat16), v.astype(jnp.bfloat16),
                 preferred_element_type=jnp.float32)                 # (B, D) f32
    o_ref[...] = (pv * pl.reciprocal(denom, approx=False)).astype(o_ref.dtype)


# ---------------------------------------------------------------------------
# Wrapper: one pallas_call over N stacked attention problems
# ---------------------------------------------------------------------------
def self_attention_pallas(x, packed):
    """x: (N, B, D) stacked independent calls, or a single (B, D) call."""
    squeeze = x.ndim == 2
    if squeeze:
        x = x[None]
    N, B, D = x.shape
    w_kqv, b_kqv, d_pad = packed["w_kqv"], packed["b_kqv"], packed["d_pad"]

    kernel = functools.partial(_self_attention_kernel, d=D, d_pad=d_pad)

    flops = N * (2 * B * D * 3 * d_pad + 4 * B * B * D)
    bytes_accessed = (x.size * 4) + (w_kqv.size * 2) + (b_kqv.size * 4) + (N * B * D * 4)
    transcendentals = N * B * B

    out = pl.pallas_call(
        kernel,
        out_shape=jax.ShapeDtypeStruct((N, B, D), jnp.float32),
        grid=(N,),
        in_specs=[
            # x tiles stream, one (B, D) problem per grid step.
            pl.BlockSpec((None, B, D), lambda n: (n, 0, 0)),
            # Weights / biases: constant block index -> DMA'd once, VMEM-resident.
            pl.BlockSpec((D, 3 * d_pad), lambda n: (0, 0)),
            pl.BlockSpec((1, 3 * d_pad), lambda n: (0, 0)),
        ],
        out_specs=pl.BlockSpec((None, B, D), lambda n: (n, 0, 0)),
        compiler_params=pltpu.CompilerParams(
            dimension_semantics=("parallel",)),     # shard N across v7x's 2 TCs
        cost_estimate=pl.CostEstimate(
            flops=flops, transcendentals=transcendentals,
            bytes_accessed=bytes_accessed),
    )(x, w_kqv, b_kqv)

    return out[0] if squeeze else out


# ---------------------------------------------------------------------------
# Parameter init (PyTorch nn.Linear-style uniform bounds) + one-time packing
# ---------------------------------------------------------------------------
def _linear_init(key, fan_in, fan_out):
    kw, kb = jax.random.split(key)
    bound = 1.0 / math.sqrt(fan_in)
    w = jax.random.uniform(kw, (fan_in, fan_out), jnp.float32, -bound, bound)
    b = jax.random.uniform(kb, (fan_out,), jnp.float32, -bound, bound)
    return w, b


def init_params(key, d):
    kk, kq, kv = jax.random.split(key, 3)
    w_k, b_k = _linear_init(kk, d, d)
    w_q, b_q = _linear_init(kq, d, d)
    w_v, b_v = _linear_init(kv, d, d)
    return {"w_k": w_k, "b_k": b_k,
            "w_q": w_q, "b_q": b_q,
            "w_v": w_v, "b_v": b_v}


def pack_params(params, *, lane=128):
    """Done ONCE (not per forward call).  Fuses K/Q/V weights/biases into single
    slabs (bf16 W, f32 b) and pads every column block to a multiple of 128
    lanes so the in-kernel k/q/v slices start on vreg-tile boundaries."""
    d = params["w_k"].shape[0]
    d_pad = ((d + lane - 1) // lane) * lane

    def pad_w(w):
        return jnp.pad(w, ((0, 0), (0, d_pad - d)))

    def pad_b(b):
        return jnp.pad(b, ((0, d_pad - d),))

    w_kqv = jnp.concatenate(
        [pad_w(params["w_k"]), pad_w(params["w_q"]), pad_w(params["w_v"])],
        axis=1).astype(jnp.bfloat16)                             # (D, 3*Dp) bf16
    b_kqv = jnp.concatenate(
        [pad_b(params["b_k"]), pad_b(params["b_q"]), pad_b(params["b_v"])],
        axis=0).reshape(1, -1).astype(jnp.float32)               # (1, 3*Dp) f32
    return {"w_kqv": w_kqv, "b_kqv": b_kqv, "d_pad": d_pad}


# ---------------------------------------------------------------------------
# References
# ---------------------------------------------------------------------------
def self_attention_ref(x, params):
    """Pure-f32 reference mirroring the PyTorch forward exactly."""
    d = x.shape[1]
    k = x @ params["w_k"] + params["b_k"]
    q = x @ params["w_q"] + params["b_q"]
    v = x @ params["w_v"] + params["b_v"]
    scores = (q @ k.T) / jnp.sqrt(jnp.float32(d))
    attn = jax.nn.softmax(scores, axis=-1)
    return attn @ v


def self_attention_ref_quantized(x, packed, d):
    """Bit-level mirror of the kernel's bf16-operand / f32-accumulate numerics
    (tight-tolerance check)."""
    d_pad = packed["d_pad"]
    kqv = jax.lax.dot_general(
        x.astype(jnp.bfloat16), packed["w_kqv"], (((1,), (0,)), ((), ())),
        preferred_element_type=jnp.float32) + packed["b_kqv"]
    k = kqv[:, 0 * d_pad: 0 * d_pad + d]
    q = kqv[:, 1 * d_pad: 1 * d_pad + d]
    v = kqv[:, 2 * d_pad: 2 * d_pad + d]
    scores = jax.lax.dot_general(
        q.astype(jnp.bfloat16), k.astype(jnp.bfloat16), (((1,), (1,)), ((), ())),
        preferred_element_type=jnp.float32) * (1.0 / math.sqrt(d))
    m = jnp.max(scores, axis=-1, keepdims=True)
    p = jnp.exp(scores - m)
    denom = jnp.sum(p, axis=-1, keepdims=True)
    pv = jax.lax.dot_general(
        p.astype(jnp.bfloat16), v.astype(jnp.bfloat16), (((1,), (0,)), ((), ())),
        preferred_element_type=jnp.float32)
    return pv / denom


# ---------------------------------------------------------------------------
if __name__ == "__main__":
    # N stacked agent/timestep calls, each an independent (B, D) attention.
    N, B, D = 4, 8, 128

    key = jax.random.PRNGKey(0)
    k_par, k_x = jax.random.split(key)

    params = init_params(k_par, D)
    packed = pack_params(params)
    x = jax.random.normal(k_x, (N, B, D), jnp.float32)

    out = jax.block_until_ready(self_attention_pallas(x, packed))
    assert out.shape == (N, B, D)

    # 1) Loose check vs the f32 PyTorch-equivalent reference (bf16 weight quant).
    ref32 = jax.vmap(lambda xi: self_attention_ref(xi, params))(x)
    assert jnp.allclose(out, ref32, rtol=5e-2, atol=5e-2), \
        float(jnp.max(jnp.abs(out - ref32)))

    # 2) Tight check vs a reference that mirrors the kernel's bf16/f32 numerics.
    refq = jax.vmap(lambda xi: self_attention_ref_quantized(xi, packed, D))(x)
    assert jnp.allclose(out, refq, rtol=2e-3, atol=2e-3), \
        float(jnp.max(jnp.abs(out - refq)))

    print("KERNEL_OK")
</pallas_src>

<mosaic_0001>
module attributes {stable_mosaic.version = 11 : i64} {
  func.func @_self_attention_kernel(%arg0: i32, %arg1: memref<1x8x128xf32, #tpu.memory_space<vmem>>, %arg2: memref<128x384xbf16, #tpu.memory_space<vmem>>, %arg3: memref<1x384xf32, #tpu.memory_space<vmem>>, %arg4: memref<1x8x128xf32, #tpu.memory_space<vmem>>) attributes {dimension_semantics = [#tpu.dimension_semantics<parallel>], iteration_bounds = array<i64: 4>, scalar_prefetch = 0 : i64, scratch_operands = 0 : i64, tpu.core_type = #tpu.core_type<tc>, window_params = [{transform_indices = @transform_0, window_bounds = array<i64: 1, 8, 128>}, {pipeline_mode = #tpu.pipeline_mode<synchronous>, transform_indices = @transform_1, window_bounds = array<i64: 128, 384>}, {pipeline_mode = #tpu.pipeline_mode<synchronous>, transform_indices = @transform_2, window_bounds = array<i64: 1, 384>}, {transform_indices = @transform_3, window_bounds = array<i64: 1, 8, 128>}]} {
    %c0 = arith.constant 0 : index
    %c0_0 = arith.constant 0 : index
    %c0_1 = arith.constant 0 : index
    %0 = vector.load %arg1[%c0, %c0_0, %c0_1] : memref<1x8x128xf32, #tpu.memory_space<vmem>>, vector<1x8x128xf32>
    %1 = vector.shape_cast %0 : vector<1x8x128xf32> to vector<8x128xf32>
    %2 = arith.truncf %1 : vector<8x128xf32> to vector<8x128xbf16>
    %c0_2 = arith.constant 0 : index
    %c0_3 = arith.constant 0 : index
    %3 = vector.load %arg2[%c0_2, %c0_3] : memref<128x384xbf16, #tpu.memory_space<vmem>>, vector<128x384xbf16>
    %cst = arith.constant dense<0.000000e+00> : vector<8x384xf32>
    %4 = tpu.matmul %2, %3, %cst {dimension_numbers = #tpu.dot_dimension_numbers<[1], [0], [0], [1], [0, 0, 1, 1], [], []>} : vector<8x128xbf16>, vector<128x384xbf16>, vector<8x384xf32> -> vector<8x384xf32>
    %c0_4 = arith.constant 0 : index
    %c0_5 = arith.constant 0 : index
    %5 = vector.load %arg3[%c0_4, %c0_5] : memref<1x384xf32, #tpu.memory_space<vmem>>, vector<1x384xf32>
    %6 = vector.broadcast %5 : vector<1x384xf32> to vector<8x384xf32>
    %7 = arith.addf %4, %6 : vector<8x384xf32>
    %8 = vector.extract_strided_slice %7 {offsets = [0, 0], sizes = [8, 128], strides = [1, 1]} : vector<8x384xf32> to vector<8x128xf32>
    %9 = vector.extract_strided_slice %7 {offsets = [0, 128], sizes = [8, 128], strides = [1, 1]} : vector<8x384xf32> to vector<8x128xf32>
    %10 = vector.extract_strided_slice %7 {offsets = [0, 256], sizes = [8, 128], strides = [1, 1]} : vector<8x384xf32> to vector<8x128xf32>
    %11 = arith.truncf %9 : vector<8x128xf32> to vector<8x128xbf16>
    %12 = arith.truncf %8 : vector<8x128xf32> to vector<8x128xbf16>
    %cst_6 = arith.constant dense<0.000000e+00> : vector<8x8xf32>
    %13 = tpu.matmul %11, %12, %cst_6 {dimension_numbers = #tpu.dot_dimension_numbers<[1], [1], [0], [0], [0, 0, 1, 0], [], []>} : vector<8x128xbf16>, vector<8x128xbf16>, vector<8x8xf32> -> vector<8x8xf32>
    %cst_7 = arith.constant 0.0883883461 : f32
    %14 = vector.broadcast %cst_7 : f32 to vector<8x8xf32>
    %15 = arith.mulf %13, %14 : vector<8x8xf32>
    %cst_8 = arith.constant dense<0xFF800000> : vector<8xf32>
    %16 = vector.multi_reduction <maximumf>, %15, %cst_8 [1] : vector<8x8xf32> to vector<8xf32>
    %17 = vector.shape_cast %16 : vector<8xf32> to vector<8x1xf32>
    %18 = vector.broadcast %17 : vector<8x1xf32> to vector<8x8xf32>
    %19 = arith.subf %15, %18 : vector<8x8xf32>
    %20 = math.exp %19 : vector<8x8xf32>
    %cst_9 = arith.constant dense<0.000000e+00> : vector<8xf32>
    %21 = vector.multi_reduction <add>, %20, %cst_9 [1] : vector<8x8xf32> to vector<8xf32>
    %22 = vector.shape_cast %21 : vector<8xf32> to vector<8x1xf32>
    %23 = arith.truncf %20 : vector<8x8xf32> to vector<8x8xbf16>
    %24 = arith.truncf %10 : vector<8x128xf32> to vector<8x128xbf16>
    %cst_10 = arith.constant dense<0.000000e+00> : vector<8x128xf32>
    %25 = tpu.matmul %23, %24, %cst_10 {dimension_numbers = #tpu.dot_dimension_numbers<[1], [0], [0], [1], [0, 0, 1, 1], [], []>} : vector<8x8xbf16>, vector<8x128xbf16>, vector<8x128xf32> -> vector<8x128xf32>
    %26 = tpu.reciprocal %22 : vector<8x1xf32> -> vector<8x1xf32>
    %27 = vector.broadcast %26 : vector<8x1xf32> to vector<8x128xf32>
    %28 = arith.mulf %25, %27 : vector<8x128xf32>
    %c0_11 = arith.constant 0 : index
    %c0_12 = arith.constant 0 : index
    %c0_13 = arith.constant 0 : index
    %29 = vector.load %arg4[%c0_11, %c0_12, %c0_13] : memref<1x8x128xf32, #tpu.memory_space<vmem>>, vector<1x8x128xf32>
    %30 = vector.shape_cast %29 : vector<1x8x128xf32> to vector<8x128xf32>
    %31 = vector.shape_cast %28 : vector<8x128xf32> to vector<1x8x128xf32>
    tpu.vector_store %arg4[%c0_11, %c0_12, %c0_13], %31 {strides = array<i32>} : memref<1x8x128xf32, #tpu.memory_space<vmem>>, vector<1x8x128xf32>,
    return
  }
  func.func @transform_0(%arg0: i32) -> (i32, i32, i32) {
    %c0_i32 = arith.constant 0 : i32
    %c0_i32_0 = arith.constant 0 : i32
    %c0_i32_1 = arith.constant 0 : i32
    return %arg0, %c0_i32, %c0_i32_0 : i32, i32, i32
  }
  func.func @transform_1(%arg0: i32) -> (i32, i32) {
    %c0_i32 = arith.constant 0 : i32
    %c0_i32_0 = arith.constant 0 : i32
    %c0_i32_1 = arith.constant 0 : i32
    return %c0_i32, %c0_i32_0 : i32, i32
  }
  func.func @transform_2(%arg0: i32) -> (i32, i32) {
    %c0_i32 = arith.constant 0 : i32
    %c0_i32_0 = arith.constant 0 : i32
    %c0_i32_1 = arith.constant 0 : i32
    return %c0_i32, %c0_i32_0 : i32, i32
  }
  func.func @transform_3(%arg0: i32) -> (i32, i32, i32) {
    %c0_i32 = arith.constant 0 : i32
    %c0_i32_0 = arith.constant 0 : i32
    %c0_i32_1 = arith.constant 0 : i32
    return %arg0, %c0_i32, %c0_i32_0 : i32, i32, i32
  }
}

</mosaic_0001>

<bundles_post_ra>
// kernel: tpu_custom_call.1
= control target key start
LH: loop header
LB: loop body
LE: loop exit
PB: predicated region body
PF: predicated region fallthrough
CT: control target
= control target key end

     0   :  { %8 = vsyncpa [#allocation3], 0  ;;  %s1204_s0 = inlined_call_operand.hbm [shape: f32[4,8,128], index: 0, kind: input, shape index: {}]   ;;  %s1205_s1 = inlined_call_operand.hbm [shape: bf16[128,384], index: 1, kind: input, shape index: {}]   ;;  %s1206_s2 = inlined_call_operand.vmem [shape: f32[1,384], index: 2, kind: input, shape index: {}]   ;;  %s1207_s3 = inlined_call_operand.hbm [shape: f32[4,8,128], index: 3, kind: output, shape index: {}]  }
   0x1   :  { %10 = vsyncpa [#allocation3 + $0x1], 0 }
   0x2   :  { %11 = vsyncpa [#allocation6], 0 }
   0x3   :  { %12 = vsyncpa [#allocation4], 0 }
   0x4   :  { %14 = vsyncpa [#allocation4 + $0x1], 0  ;;  %s1001_s12 = smov 0   ;;  %s1003_s13 = smov 0  }
   0x5   :  { %s1005_s14 = smov 0   ;;  %s1007_s15 = smov 0  }
   0x6 LB: > { %s1022_s16 = sadd.s32 4294967295, %s971_s15   ;;  %s661_s17 = sadd.s32 4294967294, %s971_s15   ;;  %s971_s15 = sphi %s1007_s15, %s1226_s15   ;;  %s967_s14 = sphi %s1005_s14, %s1225_s14   ;;  %s963_s13 = sphi %s1003_s13, %s1224_s13   ;;  %s959_s12 = sphi %s1001_s12, %s1223_s12  }
   0x7   : > { %p40_p0 = scmp.ne.s32.totalorder %s963_s13, %s959_s12  ;;  %p1208_p1 = scmp.eq.s32.totalorder %s1022_s16, 0 }
   0x8   : > { %p112_p3 = scmp.eq.s32.totalorder %s661_s17, 3  ;;  %p662_p5 = scmp.ge.s32.totalorder %s971_s15, 1 }
   0x9   : > { %p1031_p4 = por %p1208_p1, %p40_p0  ;;  %p119_p7 = scmp.lt.s32.totalorder %s971_s15, 5 }
   0xa   : > { %p1036_p6 = por %p112_p3, %p40_p0  ;;  %s973_s21 = smov [#allocation5]  }
   0xb   : > { %s1211_s18 = scalar_select %p1031_p4, 1, 0 }
   0xc   : > { %s1212_s19 = scalar_select %p1036_p6, 1, 0 }
   0xd   : > { %p1041_p8 = pnand %p662_p5, %p119_p7  ;;  %s131_s22 = sshll.u32 %s973_s21, 4  ;;  %s132_s22 = int_to_ptr.vmem [resolvable:$true] %s131_s22 }
   0xe   : > { %s1054_s24 = sadd.s32 1, %s971_s15   ;;  %s27_s25 = sadd.s32 1, %s967_s14 }
   0xf   : > { %s1213_s20 = scalar_select %p1041_p8, 1, 0 }
  0x10   : > { %p753_p9 = pneg %p1041_p8  ;;  %s24_s26 = ssub.s32 %s971_s15, %s1054_s24 }
  0x11   : > { %s843_s29 = scalar_lea.hbm %s1205_s1, 3072 }
  0x12   : > { %p1049_p10 = pnand %p753_p9, %p1208_p1  ;;  %p844_p11 = scmp.ne.s32.totalorder %s1205_s1, %s843_s29 }
  0x13   : > { %p850_p3 = scmp.lt.u32.totalorder %s843_s29, %s1205_s1 }
  0x14   : > { %p845_p12 = pneg %p1049_p10 }
  0x16   : > { %p846_p13 = pnand %p845_p12, %p844_p11 }
  0x18   : > { %p847_p0 = pneg %p846_p13 }
  0x1a   : > { %p852_p5 = pnand %p850_p3, %p847_p0 }
  0x1c   : > { %855 = shalt.err (!%p852_p5)
}
  0x1d   : > { %s856_s7 = scalar_lea.vmem %s132_s22, 3072  ;;  %p864_p2 = scmp.lt.s32.totalorder %s132_s22, %s132_s22 }
  0x1e   : > { %p857_p7 = scmp.ne.s32.totalorder %s132_s22, %s856_s7  ;;  %p865_p6 = scmp.lt.s32.totalorder %s856_s7, %s856_s7 }
  0x20   : > { %p859_p9 = pnand %p857_p7, %p845_p12  ;;  %p866_p4 = por %p865_p6, %p864_p2 }
  0x22   : > { %p860_p1 = pneg %p859_p9 }
  0x24   : > { %p867_p8 = pnand %p866_p4, %p860_p1 }
  0x26   : > { %870 = shalt.err (!%p867_p8)
}
  0x27   : > { %s974_s8 = smov 192   ;;  %s975_s9 = smov 12  }
  0x28   : > { %756 = dma.hbm_to_vmem [thread:$0]  (!%p1049_p10), %s1205_s1, 3072, %s132_s22, [#allocation6], %s974_s8, %s974_s8, %s975_s9  }
  0x29   : > { %p25_p11 = scmp.eq.s32.totalorder %s24_s26, 0  ;;  %p34_p2 = scmp.ne.s32.totalorder %s967_s14, %s963_s13 }
  0x2a   : > { %p35_p1 = scmp.eq.s32.totalorder %s971_s15, 0  ;;  %p766_p4 = scmp.lt.s32.totalorder %s971_s15, 4 }
  0x2b   : > { %s1080_s17 = scalar_select %p25_p11, %s967_s14, %s27_s25  }
  0x2c   : > { %p36_p6 = por %p35_p1, %p34_p2  ;;  %p1215_p8 = scmp.eq.s32.totalorder %s1022_s16, 3 }
  0x2d   : > { %s148_s27 = sand.u32 1, %s967_s14   ;;  %s666_s28 = sshll.u32 %s971_s15, 7 }
  0x2e   : > { %p1084_p12 = por %p1215_p8, %p34_p2  ;;  %s665_s29 = sshll.u32 %s148_s27, 3 }
  0x2f   : > { %s1093_s4 = scalar_lea.hbm %s1204_s0, %s666_s28  ;;  %s152_s22 = scalar_lea.vmem [#allocation2], %s665_s29 }
  0x30   : > { %s159_s25 = sshll.u32 %s152_s22, 4  ;;  %p1095_p10 = pnand %p766_p4, %p36_p6  ;;  %s1099_s25 = int_to_ptr.vmem [resolvable:$true] %s159_s25 }
  0x31   : > { %s149_s5 = scalar_lea.sflag [#allocation3], %s148_s27  ;;  %s871_s6 = scalar_lea.hbm %s1093_s4, 128 }
  0x32   : > { %p872_p13 = scmp.ne.s32.totalorder %s1093_s4, %s871_s6  ;;  %p873_p0 = pneg %p1095_p10 }
  0x33   : > { %s876_s9 = scalar_lea.hbm %s1204_s0, 512  ;;  %p877_p7 = scmp.lt.u32.totalorder %s1093_s4, %s1204_s0 }
  0x34   : > { %p874_p3 = pnand %p873_p0, %p872_p13  ;;  %p878_p9 = scmp.lt.u32.totalorder %s876_s9, %s871_s6 }
  0x35   : > { %p880_p2 = scmp.lt.u32.totalorder %s871_s6, %s1093_s4 }
  0x36   : > { %p875_p5 = pneg %p874_p3  ;;  %p879_p11 = por %p878_p9, %p877_p7 }
  0x38   : > { %p881_p1 = por %p880_p2, %p879_p11 }
  0x3a   : > { %p882_p4 = pnand %p881_p1, %p875_p5 }
  0x3c   : > { %885 = shalt.err (!%p882_p4)
}
  0x3d   : > { %s886_s27 = scalar_lea.vmem %s1099_s25, 128  ;;  %s976_s28 = smov [#allocation2]  }
  0x3e   : > { %p887_p6 = scmp.ne.s32.totalorder %s1099_s25, %s886_s27  ;;  %s891_s29 = sshll.u32 %s976_s28, 4  ;;  %s892_s29 = int_to_ptr.vmem [resolvable:$false] %s891_s29 }
  0x3f   : > { %s893_s23 = scalar_lea.vmem %s892_s29, 256  ;;  %p894_p3 = scmp.lt.s32.totalorder %s1099_s25, %s892_s29 }
  0x40   : > { %p889_p8 = pnand %p887_p6, %p873_p0  ;;  %p895_p7 = scmp.lt.s32.totalorder %s893_s23, %s886_s27 }
  0x42   : > { %p890_p13 = pneg %p889_p8  ;;  %p896_p9 = por %p895_p7, %p894_p3 }
  0x44   : > { %p897_p11 = pnand %p896_p9, %p890_p13 }
  0x46   : > { %900 = shalt.err (!%p897_p11)
}
  0x47   : > { %760 = dma.hbm_to_vmem [thread:$0]  (!%p1095_p10), %s1093_s4, 128, %s1099_s25, %s149_s5  }
  0x48   : > { %p1218_p5 = scmp.ne.s32.totalorder %s1213_s20, 0 }
  0x49   : > { %s1129_s30 = sand.u32 (!%p1218_p5), 1, %s963_s13   ;;  %p1219_p0 = scmp.ne.s32.totalorder (!%p1218_p5), %s1211_s18, 0 }
  0x4a   : > { %168 = sbr.rel (%p1218_p5) target bundleno = 943 (0x3af), region = 32  ;;  %s668_s22 = sshll.u32 (!%p1218_p5), %s1129_s30, 3 }
  0x4b   : > { %s171_s6 = scalar_lea.sflag (!%p1218_p5), [#allocation3], %s1129_s30  ;;  %s1135_s7 = scalar_lea.vmem (!%p1218_p5), [#allocation2], %s668_s22 }
  0x51   : > { %946 = dma.done.wait (%p1219_p0), %s171_s6, 128  }
  0x52   : > { %948 = vsyncadd (%p1219_p0), %s171_s6, 4294967168  ;;  %p1220_p10 = scmp.eq.s32.totalorder %s1022_s16, 0 }
  0x54   : > { %950 = dma.done.wait (%p1220_p10), [#allocation6], 3072   ;;  %p1221_p2 = pmov %p1220_p10 }
  0x55   : > { %v977_v0 = vmov 0   ;;  %v807_v1 = vld [vmem:[#allocation5 + $0x4] ss:$12 sps:$4 sm:$0xff]   ;;  %v809_v2 = vld [vmem:[#allocation5] ss:$12 sps:$4 sm:$0xff]   ;;  %v978_v19 = vmov 0.0   ;;  %v238_v28 = vlaneseq }
  0x56   : > { %952 = vsyncadd (%p1221_p2), [#allocation6], 4294964224  ;;  %413 = vmatprep.mubr.bf16.mxu0 %v977_v0  ;;  %381 = vmatprep.subr.bf16.mxu0 %v807_v1  ;;  %v810_v3 = vld [vmem:[#allocation5 + $0x1c] ss:$12 sps:$4 sm:$0xff]   ;;  %v812_v4 = vld [vmem:[#allocation5 + $0x18] ss:$12 sps:$4 sm:$0xff]  }
  0x57   : > { %382 = vmatpush1.bf16.msra.mxu0 %v809_v2  ;;  %v813_v5 = vld [vmem:[#allocation5 + $0x34] ss:$12 sps:$4 sm:$0xff]   ;;  %v815_v6 = vld [vmem:[#allocation5 + $0x30] ss:$12 sps:$4 sm:$0xff]   ;;  %v816_v7 = vld [vmem:[#allocation5 + $0x4c] ss:$12 sps:$4 sm:$0xff]   ;;  %713 = vmatprep.subr.bf16.mxu1 %v978_v19 }
  0x58   : > { %383 = vmatprep.subr.bf16.mxu0 %v810_v3  ;;  %v818_v8 = vld [vmem:[#allocation5 + $0x48] ss:$12 sps:$4 sm:$0xff]   ;;  %v819_v9 = vld [vmem:[#allocation5 + $0x64] ss:$12 sps:$4 sm:$0xff]   ;;  %v821_v10 = vld [vmem:[#allocation5 + $0x60] ss:$12 sps:$4 sm:$0xff]  }
  0x59   : > { %v822_v11 = vld [vmem:[#allocation5 + $0x7c] ss:$12 sps:$4 sm:$0xff]   ;;  %v824_v12 = vld [vmem:[#allocation5 + $0x78] ss:$12 sps:$4 sm:$0xff]   ;;  %v825_v13 = vld [vmem:[#allocation5 + $0x94] ss:$12 sps:$4 sm:$0xff]  }
  0x5a   : > { %v827_v14 = vld [vmem:[#allocation5 + $0x90] ss:$12 sps:$4 sm:$0xff]   ;;  %v828_v15 = vld [vmem:[#allocation5 + $0xac] ss:$12 sps:$4 sm:$0xff]   ;;  %v830_v16 = vld [vmem:[#allocation5 + $0xa8] ss:$12 sps:$4 sm:$0xff]  }
  0x5b   : > { %384 = vmatpush1.bf16.msra.mxu0 %v812_v4  ;;  %v202_v17 = vld [vmem:[%s1135_s7] sm:$0xff]  ;;  %vm979_vm0 = vmmov 0   ;;  %v832_v21 = vld [vmem:[#allocation5 + $0x20] ss:$12 sps:$4 sm:$0xff]   ;;  %v239_v29 = vshrl.u32 %v238_v28, 7  ;;  %vm505_vm1 = vcmask 64512  }
  0x5c   : > { %385 = vmatprep.subr.bf16.mxu0 %v813_v5  ;;  %v203_v18 = vpack.c.bf16 %v202_v17, %v202_v17  ;;  %729 = vmatprep.mubr.msk.bf16.mxu1 %vm979_vm0, %v978_v19  ;;  %v831_v20 = vld [vmem:[#allocation5 + $0x8] ss:$12 sps:$4 sm:$0xff]   ;;  %v833_v22 = vld [vmem:[#allocation5 + $0x38] ss:$12 sps:$4 sm:$0xff]   ;;  %v834_v23 = vld [vmem:[#allocation5 + $0x50] ss:$12 sps:$4 sm:$0xff]  }
  0x5d   : > { %714 = vmatpush3.bf16.msra.mxu1 %v831_v20  ;;  %v835_v24 = vld [vmem:[#allocation5 + $0x68] ss:$12 sps:$4 sm:$0xff]   ;;  %v836_v25 = vld [vmem:[#allocation5 + $0x80] ss:$12 sps:$4 sm:$0xff]   ;;  %v837_v26 = vld [vmem:[#allocation5 + $0x98] ss:$12 sps:$4 sm:$0xff]  }
  0x5e   : > { %715 = vmatprep.subr.bf16.mxu1 %v978_v19  ;;  %v838_v27 = vld [vmem:[#allocation5 + $0xb0] ss:$12 sps:$4 sm:$0xff]   ;;  %v240_v30 = vsub.s32 0, %v239_v29  ;;  %v244_v33 = vsub.s32 1, %v239_v29  ;;  %v248_v49 = vsub.s32 2, %v239_v29  ;;  %vm520_vm2 = vcmask 1043456  }
  0x5f   : > { %386 = vmatpush1.bf16.msra.mxu0 %v815_v6  ;;  %v236_v31 = vld [vmem:[%s1206_s2] sm:$0x7]  ;;  %s697_s4 = sshll.u32 %s1022_s16, 7  ;;  %s200_s25 = scalar_lea.vmem [#allocation7], %s668_s22 }
  0x60   : > { %387 = vmatprep.subr.bf16.mxu0 %v816_v7  ;;  %v241_v32 = vrot.slane %v236_v31, %v240_v30  ;;  %v245_v37 = vrot.slane %v236_v31, %v244_v33  ;;  %v249_v52 = vrot.slane %v236_v31, %v248_v49  ;;  %s581_s26 = sshll.u32 %s200_s25, 4  ;;  %s1161_s9 = scalar_lea.hbm %s1207_s3, %s697_s4  ;;  %s1163_s26 = int_to_ptr.vmem [resolvable:$true] %s581_s26 }
  0x61   : > { %716 = vmatpush3.bf16.msra.mxu1 %v832_v21  ;;  %s568_s16 = scalar_lea.sflag [#allocation4], %s1129_s30  ;;  %s901_s10 = scalar_lea.vmem %s1163_s26, 128 }
  0x62   : > { %717 = vmatprep.subr.bf16.mxu1 %v978_v19  ;;  %p902_p1 = scmp.ne.s32.totalorder %s1163_s26, %s901_s10  ;;  %s980_s11 = smov [#allocation7]  }
  0x63   : > { %388 = vmatpush1.bf16.msra.mxu0 %v818_v8  ;;  %s905_s27 = sshll.u32 %s980_s11, 4  ;;  %s906_s27 = int_to_ptr.vmem [resolvable:$false] %s905_s27 }
  0x64   : > { %389 = vmatprep.subr.bf16.mxu0 %v819_v9  ;;  %p903_p4 = pnand %p902_p1, %p1084_p12  ;;  %s907_s28 = scalar_lea.vmem %s906_s27, 256 }
  0x65   : > { %718 = vmatpush3.bf16.msra.mxu1 %v833_v22  ;;  %p908_p8 = scmp.lt.s32.totalorder %s1163_s26, %s906_s27  ;;  %p909_p13 = scmp.lt.s32.totalorder %s907_s28, %s901_s10 }
  0x66   : > { %719 = vmatprep.subr.bf16.mxu1 %v978_v19  ;;  %p904_p6 = pneg %p903_p4 }
  0x67   : > { %390 = vmatpush1.bf16.msra.mxu0 %v821_v10  ;;  %p910_p3 = por %p909_p13, %p908_p8 }
  0x68   : > { %391 = vmatprep.subr.bf16.mxu0 %v822_v11 }
  0x69   : > { %720 = vmatpush3.bf16.msra.mxu1 %v834_v23  ;;  %p911_p7 = pnand %p910_p3, %p904_p6 }
  0x6a   : > { %721 = vmatprep.subr.bf16.mxu1 %v978_v19 }
  0x6b   : > { %392 = vmatpush1.bf16.msra.mxu0 %v824_v12 }
  0x6c   : > { %393 = vmatprep.subr.bf16.mxu0 %v825_v13 }
  0x6d   : > { %722 = vmatpush3.bf16.msra.mxu1 %v835_v24 }
  0x6e   : > { %723 = vmatprep.subr.bf16.mxu1 %v978_v19 }
  0x6f   : > { %394 = vmatpush1.bf16.msra.mxu0 %v827_v14 }
  0x70   : > { %395 = vmatprep.subr.bf16.mxu0 %v828_v15 }
  0x71   : > { %724 = vmatpush3.bf16.msra.mxu1 %v836_v25 }
  0x72   : > { %725 = vmatprep.subr.bf16.mxu1 %v978_v19 }
  0x73   : > { %396 = vmatpush1.bf16.msra.mxu0 %v830_v16 }
  0x74   : > { %733 = vmatprep.subr.bf16.mxu0 %v978_v19 }
  0x75   : > { %726 = vmatpush3.bf16.msra.mxu1 %v837_v26 }
  0x76   : > { %414 = vmatmul.mubr.bf16.vlgmr.msra.gmra.mrb[0].mxu0 %v203_v18  ;;  %727 = vmatprep.subr.bf16.mxu1 %v978_v19 }
  0x77   : > { %735 = vmatprep.mubr.msk.bf16.mxu0 %vm979_vm0, %v978_v19 }
  0x79   : > { %728 = vmatpush3.bf16.msra.mxu1 %v838_v27 }
  0x7a   : > { %739 = vmatprep.subr.bf16.mxu1 %v978_v19 }
  0x7c   : > { %730 = vmatmul.mubr.bf16.vlgmr.msra.gmra.mrb[0].mxu1 %v203_v18 }
  0x7d   : > { %741 = vmatprep.mubr.msk.bf16.mxu1 %vm979_vm0, %v978_v19 }
 0x149   : > { %v415_v34 = vpop.f32.mrb[0].mxu0 }
 0x14a   : > { %v416_v35 = vadd.f32 %v415_v34, %v241_v32  ;;  %v417_v36 = vpop.f32.mrb[1].mxu0 }
 0x14b   : > { %v419_v38 = vpop.f32.mrb[2].mxu0  ;;  %v418_v41 = vadd.f32 %v417_v36, %v245_v37 }
 0x14c   : > { %v463_v39 = vpack.c.bf16 %v416_v35, %v416_v35  ;;  %v420_v40 = vpop.f32.mrb[3].mxu0 }
 0x14d   : > { %v462_v42 = vpack.c.bf16 %v418_v41, %v418_v41 }
 0x14e   : > { %734 = vmatpush3.bf16.xpose.msra.mxu0 %v463_v39 }
 0x14f   : > { %v456_v50 = vpop.f32.mrb[0].mxu1 }
 0x150   : > { %v731_v51 = vpop.f32.mrb[1].mxu1  ;;  %v457_v55 = vadd.f32 %v456_v50, %v249_v52 }
 0x151   : > { %v459_v53 = vpop.f32.mrb[2].mxu1 }
 0x152   : > { %v732_v54 = vpop.f32.mrb[3].mxu1  ;;  %v516_v56 = vpack.c.bf16 %v457_v55, %v457_v55 }
 0x154   : > { %v522_v57 = vsel %vm520_vm2, %v516_v56, 0 }
 0x155   : > { %736 = vmatmul.mubr.bf16.vlgmr.msra.gmra.mrb[4].mxu0 %v462_v42  ;;  %740 = vmatpush3.bf16.msra.mxu1 %v522_v57 }
 0x228   : > { %v498_v43 = vpop.f32.mrb[4].mxu0 }
 0x229   : > { %v504_v44 = vmul.f32 0.088388346, %v498_v43  ;;  %v737_v45 = vpop.f32.mrb[5].mxu0 }
 0x22a   : > { %v501_v46 = vpop.f32.mrb[6].mxu0 }
 0x22b   : > { %v738_v47 = vpop.f32.mrb[7].mxu0  ;;  %v506_v48 = vsel %vm505_vm1, %v504_v44, -inf }
 0x22c   : > { %507 = vmax.xlane.f32.xlu0 %v506_v48 }
 0x2b9   : > { %v508_v58 = vpop.xlane.xlu0 %507 }
 0x2ba   : > { %v509_v59 = vsub.f32 %v504_v44, %v508_v58 }
 0x2bc   : > { %v510_v60 = vmul.f32 1.442695, %v509_v59 }
 0x2be   : > { %839 = vpow2.f32 %v510_v60 }
 0x2c8   : > { %v840_v61 = vpop.eup %839 }
 0x2c9   : > { %v512_v62 = vsel %vm505_vm1, %v840_v61, 0.0  ;;  %v515_v63 = vpack.c.bf16 %v840_v61, %v840_v61 }
 0x2ca   : > { %513 = vadd.xlane.f32.xlu0 %v512_v62 }
 0x2cb   : > { %742 = vmatmul.mubr.msk.bf16.vlgmr.msra.gmra.mrb[4].mxu1 %vm505_vm1, %v515_v63 }
 0x357   : > { %v514_v0 = vpop.xlane.xlu0 %513 }
 0x358   : > { %841 = vrcp.f32 %v514_v0 }
 0x362   : > { %v842_v1 = vpop.eup %841 }
 0x39e   : > { %v558_v2 = vpop.f32.mrb[4].mxu1 }
 0x39f   : > { %v565_v3 = vmul.f32 %v842_v1, %v558_v2  ;;  %v743_v4 = vpop.f32.mrb[5].mxu1 }
 0x3a0   : > { %v561_v5 = vpop.f32.mrb[6].mxu1 }
 0x3a1   : > { %566 = vst [vmem:[%s200_s25] sm:$0xff] %v565_v3  ;;  %v744_v6 = vpop.f32.mrb[7].mxu1 }
 0x3a2   : > { %914 = shalt.err (!%p911_p7)
}
 0x3a3   : > { %s915_s29 = scalar_lea.hbm %s1161_s9, 128  ;;  %s919_s22 = scalar_lea.hbm %s1207_s3, 512 }
 0x3a4   : > { %p916_p9 = scmp.ne.s32.totalorder %s1161_s9, %s915_s29  ;;  %p920_p0 = scmp.lt.u32.totalorder %s1161_s9, %s1207_s3 }
 0x3a5   : > { %p921_p10 = scmp.lt.u32.totalorder %s919_s22, %s915_s29  ;;  %p923_p1 = scmp.lt.u32.totalorder %s915_s29, %s1161_s9 }
 0x3a6   : > { %p917_p11 = pnand %p916_p9, %p1084_p12 }
 0x3a7   : > { %p922_p2 = por %p921_p10, %p920_p0 }
 0x3a8   : > { %p918_p5 = pneg %p917_p11 }
 0x3a9   : > { %p924_p4 = por %p923_p1, %p922_p2 }
 0x3ab   : > { %p925_p6 = pnand %p924_p4, %p918_p5 }
 0x3ad   : > { %928 = shalt.err (!%p925_p6)
}
 0x3ae   : > { %751 = dma.vmem_to_hbm [thread:$0]  (%p1084_p12), %s1163_s26, 128, %s1161_s9, %s568_s16  }
 0x3af PF: > { %p768_p8 = scmp.ge.s32.totalorder %s971_s15, 2  ;;  %s593_s18 = sand.u32 1, %s959_s12  }
 0x3b0   : > { %p1222_p13 = scmp.ne.s32.totalorder %s1212_s19, 0  ;;  %s594_s20 = scalar_lea.sflag [#allocation4], %s593_s18 }
 0x3b2   : > { %p762_p3 = pnand %p768_p8, %p1222_p13 }
 0x3b4   : > { %954 = dma.done.wait (!%p762_p3), %s594_s20, 128  }
 0x3b5   : > { %956 = vsyncadd (!%p762_p3), %s594_s20, 4294967168  ;;  %p17_p7 = scmp.ge.s32.totalorder %s1054_s24, 6   ;;  %s1223_s12 = smov %s963_s13 }
 0x3b6   : > { %s1224_s13 = smov %s967_s14  ;;  %s1225_s14 = smov %s1080_s17 }
 0x3b7   : > { %s1226_s15 = smov %s1054_s24  ;;  %19 = sbr.rel (!%p17_p7) target bundleno = 6 (0x6), region = 81 }
 0x3be   :  { %599 = vsyncpa [#allocation3], 1 }
 0x3bf   :  { %601 = vsyncpa [#allocation3 + $0x1], 1 }
 0x3c0   :  { %602 = vsyncpa [#allocation6], 1 }
 0x3c1   :  { %603 = vsyncpa [#allocation4], 1 }
 0x3c2   :  { %605 = vsyncpa [#allocation4 + $0x1], 1 }

</bundles_post_ra>
